<compile_context>
chip_gen: v6e
topology: v6e:2x2x1
jax: 0.10.0
libtpu: 0.0.40
codegen_flags: <defaults>
</compile_context>

<pallas_src>
import numpy as np
import jax
import jax.numpy as jnp
from jax.experimental import pallas as pl
from jax.experimental.pallas import tpu as pltpu

K_SPLINE = 3
NUM = 3                                               # grid intervals before extension
IN_DIM = 8
HIDDEN = 128
EMB_DIM = 68                                          # 8 + 8 + 16 + 36
G2 = NUM + 1 + 2 * K_SPLINE                           # 10 extended knots
N_COEF_BASIS = G2 - K_SPLINE - 1                      # 6
H_KNOT = 2.0 / NUM                                    # uniform knot spacing (2/3)
KNOT0 = -1.0 - K_SPLINE * H_KNOT                      # first extended knot (-3)
PAD_K = 128                                           # padded contraction dim, 1st matmul
DEFAULT_TB = 512                                      # batch tile for the tiled path


# ----------------------------- fused Pallas kernel -----------------------------

def _fused_kernel(emb_ref, budget_ref, wslab_ref, wh2_ref, bias_ref, out_ref):
    f32 = jnp.float32

    # Static, 128-aligned lane slices of the packed weight/bias slabs (no relayout).
    w1 = wslab_ref[:, 0 * HIDDEN:1 * HIDDEN]                 # (128, 128)  emb -> h
    w2 = wslab_ref[:, 1 * HIDDEN:2 * HIDDEN]                 # (128, 128)  h   -> feat
    wh1 = wslab_ref[:, 2 * HIDDEN:4 * HIDDEN]                # (128, 256)  [wc1 | wsb1]
    b1 = bias_ref[:, 0 * HIDDEN:1 * HIDDEN]                  # (1, 128)
    b2 = bias_ref[:, 1 * HIDDEN:2 * HIDDEN]                  # (1, 128)
    bh1 = bias_ref[:, 2 * HIDDEN:4 * HIDDEN]                 # (1, 256)
    bh2 = bias_ref[:, 4 * HIDDEN:5 * HIDDEN]                 # (1, 128)

    # ---- MLP trunk + merged heads: 4 MXU matmuls, f32 accumulation ----
    emb = emb_ref[...]                                                           # (B, 128)
    h = jnp.maximum(jnp.dot(emb, w1, preferred_element_type=f32) + b1, 0.0)
    feat = jnp.maximum(jnp.dot(h, w2, preferred_element_type=f32) + b2, 0.0)     # (B, 128)
    h12 = jnp.maximum(jnp.dot(feat, wh1, preferred_element_type=f32) + bh1, 0.0) # (B, 256)
    heads = jnp.dot(h12, wh2_ref[...], preferred_element_type=f32) + bh2         # (B, 128)

    # heads columns 0..5: mean_j coef ; column 6: scale_base ; rest: zero padding.
    coef_mean = heads[:, 0:N_COEF_BASIS]                                          # (B, 6)
    sb = heads[:, N_COEF_BASIS:N_COEF_BASIS + 1]                                  # (B, 1)

    # TODO(synk): scale_sp_net is computed in the torch forward but never used in the
    # output; it is intentionally omitted here.

    # ---- B-spline basis (Cox-de-Boor) on the baked uniform extended grid ----
    # Carried as a Python list of (B, A) tiles with scalar knot constants: no 3-D
    # (B, 9, A) tensor, no sublane-shift relayouts, denominators are compile-time.
    t = budget_ref[...]                                                           # (B, A)
    knots = [KNOT0 + i * H_KNOT for i in range(G2)]                               # python floats
    # order-0 indicator (matches torch k==0 branch, half-open intervals)
    val = [jnp.logical_and(t >= knots[i], t < knots[i + 1]).astype(f32)
           for i in range(G2 - 1)]                                                # 9 x (B, A)
    for kk in range(1, K_SPLINE + 1):
        inv = 1.0 / (kk * H_KNOT)          # never zero for the uniform grid
        val = [((t - knots[i]) * inv) * val[i]
               + ((knots[i + kk + 1] - t) * inv) * val[i + 1]
               for i in range(len(val) - 1)]
    # val: 6 x (B, A)

    # ---- combine: unrolled VPU FMA over the 6 basis functions ----
    spline = val[0] * coef_mean[:, 0:1]
    for k in range(1, N_COEF_BASIS):
        spline = spline + val[k] * coef_mean[:, k:k + 1]                          # (B, A)

    base = t * jax.nn.sigmoid(t)                                                  # SiLU(budget)
    # mean_j(sb*base + sb*y_j) == sb * (base + mean_j y_j)
    out_ref[...] = sb * (base + spline)                                           # (B, A)


# ----------------------------- one-time weight folding / packing -----------------------------

def prepare_params(params):
    """One-time, offline weight preprocessing (NOT in the per-call path)."""
    # The kernel bakes the uniform extended knot grid as constants and folds the mean
    # over IN_DIM into the coef head; both are only valid if every input dim shares the
    # exact uniform grid.  Assert it here, in the production param-prep path.
    g = np.asarray(params['grid'], np.float32)
    expected = (KNOT0 + H_KNOT * np.arange(G2, dtype=np.float64)).astype(np.float32)
    np.testing.assert_allclose(g, np.broadcast_to(expected, (IN_DIM, G2)), rtol=0, atol=1e-5)

    # Pad contraction dim 68 -> 128 so the first matmul is lane/MXU aligned.
    w1_p = jnp.pad(params['w1'], ((0, PAD_K - EMB_DIM), (0, 0)))                  # (128, 128)

    # Fold the mean over IN_DIM (j) into the coef head:
    #   mean_j coef[b, j*6 + k] = hc @ wc2m + bc2m   with wc2m/bc2m averaged over j.
    wc2m = params['wc2'].reshape(HIDDEN, IN_DIM, N_COEF_BASIS).mean(axis=1)       # (128, 6)
    bc2m = params['bc2'].reshape(IN_DIM, N_COEF_BASIS).mean(axis=0)               # (6,)

    # Merged head layer 1: one (128, 256) RHS instead of two 128-wide matmuls.
    wh1 = jnp.concatenate([params['wc1'], params['wsb1']], axis=1)                # (128, 256)
    bh1 = jnp.concatenate([params['bc1'], params['bsb1']], axis=1)                # (1, 256)

    # Merged head layer 2: block-diagonal, lane-padded to a (B, 128) lane-dense output.
    #   cols 0..5 <- hc @ wc2m + bc2m ; col 6 <- hs @ wsb2 + bsb2 ; cols 7..127 = 0.
    wh2 = jnp.zeros((2 * HIDDEN, HIDDEN), jnp.float32)
    wh2 = wh2.at[:HIDDEN, :N_COEF_BASIS].set(wc2m)
    wh2 = wh2.at[HIDDEN:, N_COEF_BASIS:N_COEF_BASIS + 1].set(params['wsb2'])
    bh2 = jnp.zeros((1, HIDDEN), jnp.float32)
    bh2 = bh2.at[0, :N_COEF_BASIS].set(bc2m)
    bh2 = bh2.at[0, N_COEF_BASIS].set(params['bsb2'][0, 0])

    # Pack into slabs so the kernel has 5 operands instead of 14.
    wslab = jnp.concatenate([w1_p, params['w2'], wh1], axis=1)                    # (128, 512)
    bias = jnp.concatenate([params['b1'], params['b2'], bh1, bh2], axis=1)        # (1, 640)

    return {
        'id_embedding': params['id_embedding'],
        'period_embedding': params['period_embedding'],
        'time_embedding': params['time_embedding'],
        'wslab': wslab,
        'wh2': wh2,
        'bias': bias,
    }


# ----------------------------- per-call wrapper -----------------------------

def simplenet_forward(prepped, x, budget, tb=DEFAULT_TB):
    B = x.shape[0]
    A = budget.shape[1]

    # Embedding lookups + concat (plain JAX gathers) + pad activation to 128 lanes.
    id_emb = prepped['id_embedding'][x[:, 1].astype(jnp.int32)]          # (B, 8)
    period_emb = prepped['period_embedding'][x[:, 0].astype(jnp.int32)]  # (B, 8)
    time_emb = prepped['time_embedding'][x[:, 2].astype(jnp.int32)]      # (B, 16)
    emb = jnp.concatenate([id_emb, period_emb, time_emb, x[:, 3:]], axis=1)       # (B, 68)
    emb_p = jnp.pad(emb, ((0, 0), (0, PAD_K - EMB_DIM)))                          # (B, 128)

    wslab, wh2, bias = prepped['wslab'], prepped['wh2'], prepped['bias']

    if B <= tb:
        # Single tile: no grid -> no 1-step pipeline prologue/epilogue, no double buffering.
        return pl.pallas_call(
            _fused_kernel,
            out_shape=jax.ShapeDtypeStruct((B, A), jnp.float32),
        )(emb_p, budget, wslab, wh2, bias)

    # Production batches: tile B over the grid, keep weights VMEM-resident via constant
    # index_maps, and mark the batch axis "parallel" (uses v7x's second TensorCore).
    n_tiles = pl.cdiv(B, tb)
    bp = n_tiles * tb
    emb_pp = jnp.pad(emb_p, ((0, bp - B), (0, 0)))
    budget_p = jnp.pad(budget, ((0, bp - B), (0, 0)))
    out = pl.pallas_call(
        _fused_kernel,
        out_shape=jax.ShapeDtypeStruct((bp, A), jnp.float32),
        grid=(n_tiles,),
        in_specs=[
            pl.BlockSpec((tb, PAD_K), lambda i: (i, 0)),
            pl.BlockSpec((tb, A), lambda i: (i, 0)),
            pl.BlockSpec(wslab.shape, lambda i: (0, 0)),
            pl.BlockSpec(wh2.shape, lambda i: (0, 0)),
            pl.BlockSpec(bias.shape, lambda i: (0, 0)),
        ],
        out_specs=pl.BlockSpec((tb, A), lambda i: (i, 0)),
        compiler_params=pltpu.CompilerParams(dimension_semantics=("parallel",)),
    )(emb_pp, budget_p, wslab, wh2, bias)
    return out[:B]


simplenet_forward_jit = jax.jit(simplenet_forward, static_argnames=("tb",))


# ----------------------------- params / grid -----------------------------

def extend_grid(grid, k_extend):
    h = (grid[:, -1:] - grid[:, :1]) / (grid.shape[1] - 1)
    for _ in range(k_extend):
        grid = jnp.concatenate([grid[:, :1] - h, grid], axis=1)
        grid = jnp.concatenate([grid, grid[:, -1:] + h], axis=1)
    return grid


def make_grid():
    g = jnp.linspace(-1.0, 1.0, NUM + 1)[None, :].repeat(IN_DIM, axis=0)   # (8, 4)
    return extend_grid(g, k_extend=K_SPLINE).astype(jnp.float32)           # (8, 10)


def init_params(key):
    ks = list(jax.random.split(key, 16))

    def lin(k, fan_in, fan_out):
        k1, k2 = jax.random.split(k)
        bound = 1.0 / np.sqrt(fan_in)
        w = jax.random.uniform(k1, (fan_in, fan_out), jnp.float32, -bound, bound)
        b = jax.random.uniform(k2, (1, fan_out), jnp.float32, -bound, bound)
        return w, b

    p = {}
    p['id_embedding'] = jax.random.normal(ks[0], (48, 8), jnp.float32)
    p['period_embedding'] = jax.random.normal(ks[1], (8, 8), jnp.float32)
    p['time_embedding'] = jax.random.normal(ks[2], (48, 16), jnp.float32)
    p['w1'], p['b1'] = lin(ks[3], EMB_DIM, HIDDEN)
    p['w2'], p['b2'] = lin(ks[4], HIDDEN, HIDDEN)
    p['wc1'], p['bc1'] = lin(ks[5], HIDDEN, HIDDEN)
    p['wc2'], p['bc2'] = lin(ks[6], HIDDEN, IN_DIM * N_COEF_BASIS)
    p['wsb1'], p['bsb1'] = lin(ks[7], HIDDEN, HIDDEN)
    p['wsb2'], p['bsb2'] = lin(ks[8], HIDDEN, 1)
    p['grid'] = make_grid()
    return p


# ----------------------------- pure-JAX reference -----------------------------

def _b_batch_ref(x, grid, k):
    # x: (A, 1), grid: (IN_DIM, G2) -- mirrors torch B_batch recursion exactly
    xx = x[:, :, None]
    gg = grid[None, :, :]
    if k == 0:
        return jnp.logical_and(xx >= gg[:, :, :-1], xx < gg[:, :, 1:])
    b_km1 = _b_batch_ref(x, grid, k - 1).astype(jnp.float32)
    value = ((xx - gg[:, :, :-(k + 1)]) / (gg[:, :, k:-1] - gg[:, :, :-(k + 1)]) * b_km1[:, :, :-1]
             + (gg[:, :, k + 1:] - xx) / (gg[:, :, k + 1:] - gg[:, :, 1:-k]) * b_km1[:, :, 1:])
    return jnp.nan_to_num(value)


def reference_forward(params, x, budget):
    B = x.shape[0]
    grid = params['grid']
    relu = lambda v: jnp.maximum(v, 0.0)
    id_emb = params['id_embedding'][x[:, 1].astype(jnp.int32)]
    period_emb = params['period_embedding'][x[:, 0].astype(jnp.int32)]
    time_emb = params['time_embedding'][x[:, 2].astype(jnp.int32)]
    emb = jnp.concatenate([id_emb, period_emb, time_emb, x[:, 3:]], axis=1)
    feat = relu(relu(emb @ params['w1'] + params['b1']) @ params['w2'] + params['b2'])
    coef = relu(feat @ params['wc1'] + params['bc1']) @ params['wc2'] + params['bc2']
    coef = coef.reshape(B, IN_DIM, 1, N_COEF_BASIS)
    sb = (relu(feat @ params['wsb1'] + params['bsb1']) @ params['wsb2'] + params['bsb2'])[:, None, :]
    Bs = jax.vmap(lambda b: _b_batch_ref(b[:, None], grid, K_SPLINE))(budget)   # (B, A, IN_DIM, 6)
    base = budget * jax.nn.sigmoid(budget)
    y = jnp.einsum('bajk,bjlk->bajl', Bs, coef)
    y = jnp.squeeze(y, axis=-1)
    y = sb * base[:, :, None] + sb * y
    return jnp.mean(y, axis=-1)


# ----------------------------- main -----------------------------

if __name__ == "__main__":
    key = jax.random.PRNGKey(0)
    k_p, k_d1, k_d2 = jax.random.split(key, 3)

    params = init_params(k_p)
    prepped = prepare_params(params)        # one-time weight folding / slab packing

    N_COLS = 3 + 36   # 3 index columns + 36 float features -> emb dim 68

    def make_inputs(k, batch, n_actions):
        k_x, k_b, k_i1, k_i2, k_i3 = jax.random.split(k, 5)
        period_idx = jax.random.randint(k_i1, (batch, 1), 0, 8).astype(jnp.float32)
        id_idx = jax.random.randint(k_i2, (batch, 1), 0, 48).astype(jnp.float32)
        time_idx = jax.random.randint(k_i3, (batch, 1), 0, 48).astype(jnp.float32)
        x_cont = jax.random.normal(k_x, (batch, N_COLS - 3), jnp.float32)
        xx = jnp.concatenate([period_idx, id_idx, time_idx, x_cont], axis=1)   # (batch, 39)
        bb = jax.random.uniform(k_b, (batch, n_actions), jnp.float32, -1.0, 1.0)
        return xx, bb

    # Small single-tile case: no grid, 4 fused MXU matmuls, slab-packed inputs.
    B, A = 8, 8
    x, budget = make_inputs(k_d1, B, A)
    out = simplenet_forward_jit(prepped, x, budget)
    jax.block_until_ready(out)
    assert out.shape == (B, A)
    ref = reference_forward(params, x, budget)
    np.testing.assert_allclose(np.asarray(out), np.asarray(ref), rtol=2e-4, atol=2e-5)

    # Batch-tiled path (grid over B, VMEM-resident weights, "parallel" batch axis).
    B2, A2, TB2 = 16, 8, 8
    x2, budget2 = make_inputs(k_d2, B2, A2)
    out2 = simplenet_forward_jit(prepped, x2, budget2, tb=TB2)
    jax.block_until_ready(out2)
    assert out2.shape == (B2, A2)
    ref2 = reference_forward(params, x2, budget2)
    np.testing.assert_allclose(np.asarray(out2), np.asarray(ref2), rtol=2e-4, atol=2e-5)

    print("KERNEL_OK")
</pallas_src>

<mosaic_0001>
module attributes {stable_mosaic.version = 11 : i64} {
  func.func @_fused_kernel(%arg0: memref<8x128xf32, #tpu.memory_space<vmem>>, %arg1: memref<8x8xf32, #tpu.memory_space<vmem>>, %arg2: memref<128x512xf32, #tpu.memory_space<vmem>>, %arg3: memref<256x128xf32, #tpu.memory_space<vmem>>, %arg4: memref<1x640xf32, #tpu.memory_space<vmem>>, %arg5: memref<8x8xf32, #tpu.memory_space<vmem>>) attributes {dimension_semantics = [], scalar_prefetch = 0 : i64, scratch_operands = 0 : i64, tpu.core_type = #tpu.core_type<tc>} {
    %c0 = arith.constant 0 : index
    %c0_0 = arith.constant 0 : index
    %0 = vector.load %arg2[%c0, %c0_0] : memref<128x512xf32, #tpu.memory_space<vmem>>, vector<128x128xf32>
    %c0_1 = arith.constant 0 : index
    %c128 = arith.constant 128 : index
    %1 = vector.load %arg2[%c0_1, %c128] : memref<128x512xf32, #tpu.memory_space<vmem>>, vector<128x128xf32>
    %c0_2 = arith.constant 0 : index
    %c256 = arith.constant 256 : index
    %2 = vector.load %arg2[%c0_2, %c256] : memref<128x512xf32, #tpu.memory_space<vmem>>, vector<128x256xf32>
    %c0_3 = arith.constant 0 : index
    %c0_4 = arith.constant 0 : index
    %3 = vector.load %arg4[%c0_3, %c0_4] : memref<1x640xf32, #tpu.memory_space<vmem>>, vector<1x128xf32>
    %c0_5 = arith.constant 0 : index
    %c128_6 = arith.constant 128 : index
    %4 = vector.load %arg4[%c0_5, %c128_6] : memref<1x640xf32, #tpu.memory_space<vmem>>, vector<1x128xf32>
    %c0_7 = arith.constant 0 : index
    %c256_8 = arith.constant 256 : index
    %5 = vector.load %arg4[%c0_7, %c256_8] : memref<1x640xf32, #tpu.memory_space<vmem>>, vector<1x256xf32>
    %c0_9 = arith.constant 0 : index
    %c512 = arith.constant 512 : index
    %6 = vector.load %arg4[%c0_9, %c512] : memref<1x640xf32, #tpu.memory_space<vmem>>, vector<1x128xf32>
    %c0_10 = arith.constant 0 : index
    %c0_11 = arith.constant 0 : index
    %7 = vector.load %arg0[%c0_10, %c0_11] : memref<8x128xf32, #tpu.memory_space<vmem>>, vector<8x128xf32>
    %cst = arith.constant dense<0.000000e+00> : vector<8x128xf32>
    %8 = tpu.matmul %7, %0, %cst {dimension_numbers = #tpu.dot_dimension_numbers<[1], [0], [0], [1], [0, 0, 1, 1], [], []>} : vector<8x128xf32>, vector<128x128xf32>, vector<8x128xf32> -> vector<8x128xf32>
    %9 = vector.broadcast %3 : vector<1x128xf32> to vector<8x128xf32>
    %10 = arith.addf %8, %9 : vector<8x128xf32>
    %cst_12 = arith.constant 0.000000e+00 : f32
    %11 = vector.broadcast %cst_12 : f32 to vector<8x128xf32>
    %12 = arith.maximumf %10, %11 : vector<8x128xf32>
    %cst_13 = arith.constant dense<0.000000e+00> : vector<8x128xf32>
    %13 = tpu.matmul %12, %1, %cst_13 {dimension_numbers = #tpu.dot_dimension_numbers<[1], [0], [0], [1], [0, 0, 1, 1], [], []>} : vector<8x128xf32>, vector<128x128xf32>, vector<8x128xf32> -> vector<8x128xf32>
    %14 = vector.broadcast %4 : vector<1x128xf32> to vector<8x128xf32>
    %15 = arith.addf %13, %14 : vector<8x128xf32>
    %cst_14 = arith.constant 0.000000e+00 : f32
    %16 = vector.broadcast %cst_14 : f32 to vector<8x128xf32>
    %17 = arith.maximumf %15, %16 : vector<8x128xf32>
    %cst_15 = arith.constant dense<0.000000e+00> : vector<8x256xf32>
    %18 = tpu.matmul %17, %2, %cst_15 {dimension_numbers = #tpu.dot_dimension_numbers<[1], [0], [0], [1], [0, 0, 1, 1], [], []>} : vector<8x128xf32>, vector<128x256xf32>, vector<8x256xf32> -> vector<8x256xf32>
    %19 = vector.broadcast %5 : vector<1x256xf32> to vector<8x256xf32>
    %20 = arith.addf %18, %19 : vector<8x256xf32>
    %cst_16 = arith.constant 0.000000e+00 : f32
    %21 = vector.broadcast %cst_16 : f32 to vector<8x256xf32>
    %22 = arith.maximumf %20, %21 : vector<8x256xf32>
    %c0_17 = arith.constant 0 : index
    %c0_18 = arith.constant 0 : index
    %23 = vector.load %arg3[%c0_17, %c0_18] : memref<256x128xf32, #tpu.memory_space<vmem>>, vector<256x128xf32>
    %cst_19 = arith.constant dense<0.000000e+00> : vector<8x128xf32>
    %24 = tpu.matmul %22, %23, %cst_19 {dimension_numbers = #tpu.dot_dimension_numbers<[1], [0], [0], [1], [0, 0, 1, 1], [], []>} : vector<8x256xf32>, vector<256x128xf32>, vector<8x128xf32> -> vector<8x128xf32>
    %25 = vector.broadcast %6 : vector<1x128xf32> to vector<8x128xf32>
    %26 = arith.addf %24, %25 : vector<8x128xf32>
    %27 = vector.extract_strided_slice %26 {offsets = [0, 0], sizes = [8, 6], strides = [1, 1]} : vector<8x128xf32> to vector<8x6xf32>
    %28 = vector.extract_strided_slice %26 {offsets = [0, 6], sizes = [8, 1], strides = [1, 1]} : vector<8x128xf32> to vector<8x1xf32>
    %c0_20 = arith.constant 0 : index
    %c0_21 = arith.constant 0 : index
    %29 = vector.load %arg1[%c0_20, %c0_21] : memref<8x8xf32, #tpu.memory_space<vmem>>, vector<8x8xf32>
    %cst_22 = arith.constant -3.000000e+00 : f32
    %30 = vector.broadcast %cst_22 : f32 to vector<8x8xf32>
    %31 = arith.cmpf oge, %29, %30 : vector<8x8xf32>
    %cst_23 = arith.constant -2.33333325 : f32
    %32 = vector.broadcast %cst_23 : f32 to vector<8x8xf32>
    %33 = arith.cmpf olt, %29, %32 : vector<8x8xf32>
    %34 = arith.andi %31, %33 : vector<8x8xi1>
    %35 = arith.extui %34 : vector<8x8xi1> to vector<8x8xi32>
    %36 = arith.sitofp %35 : vector<8x8xi32> to vector<8x8xf32>
    %cst_24 = arith.constant -2.33333325 : f32
    %37 = vector.broadcast %cst_24 : f32 to vector<8x8xf32>
    %38 = arith.cmpf oge, %29, %37 : vector<8x8xf32>
    %cst_25 = arith.constant -1.66666663 : f32
    %39 = vector.broadcast %cst_25 : f32 to vector<8x8xf32>
    %40 = arith.cmpf olt, %29, %39 : vector<8x8xf32>
    %41 = arith.andi %38, %40 : vector<8x8xi1>
    %42 = arith.extui %41 : vector<8x8xi1> to vector<8x8xi32>
    %43 = arith.sitofp %42 : vector<8x8xi32> to vector<8x8xf32>
    %cst_26 = arith.constant -1.66666663 : f32
    %44 = vector.broadcast %cst_26 : f32 to vector<8x8xf32>
    %45 = arith.cmpf oge, %29, %44 : vector<8x8xf32>
    %cst_27 = arith.constant -1.000000e+00 : f32
    %46 = vector.broadcast %cst_27 : f32 to vector<8x8xf32>
    %47 = arith.cmpf olt, %29, %46 : vector<8x8xf32>
    %48 = arith.andi %45, %47 : vector<8x8xi1>
    %49 = arith.extui %48 : vector<8x8xi1> to vector<8x8xi32>
    %50 = arith.sitofp %49 : vector<8x8xi32> to vector<8x8xf32>
    %cst_28 = arith.constant -1.000000e+00 : f32
    %51 = vector.broadcast %cst_28 : f32 to vector<8x8xf32>
    %52 = arith.cmpf oge, %29, %51 : vector<8x8xf32>
    %cst_29 = arith.constant -0.333333343 : f32
    %53 = vector.broadcast %cst_29 : f32 to vector<8x8xf32>
    %54 = arith.cmpf olt, %29, %53 : vector<8x8xf32>
    %55 = arith.andi %52, %54 : vector<8x8xi1>
    %56 = arith.extui %55 : vector<8x8xi1> to vector<8x8xi32>
    %57 = arith.sitofp %56 : vector<8x8xi32> to vector<8x8xf32>
    %cst_30 = arith.constant -0.333333343 : f32
    %58 = vector.broadcast %cst_30 : f32 to vector<8x8xf32>
    %59 = arith.cmpf oge, %29, %58 : vector<8x8xf32>
    %cst_31 = arith.constant 0.333333343 : f32
    %60 = vector.broadcast %cst_31 : f32 to vector<8x8xf32>
    %61 = arith.cmpf olt, %29, %60 : vector<8x8xf32>
    %62 = arith.andi %59, %61 : vector<8x8xi1>
    %63 = arith.extui %62 : vector<8x8xi1> to vector<8x8xi32>
    %64 = arith.sitofp %63 : vector<8x8xi32> to vector<8x8xf32>
    %cst_32 = arith.constant 0.333333343 : f32
    %65 = vector.broadcast %cst_32 : f32 to vector<8x8xf32>
    %66 = arith.cmpf oge, %29, %65 : vector<8x8xf32>
    %cst_33 = arith.constant 1.000000e+00 : f32
    %67 = vector.broadcast %cst_33 : f32 to vector<8x8xf32>
    %68 = arith.cmpf olt, %29, %67 : vector<8x8xf32>
    %69 = arith.andi %66, %68 : vector<8x8xi1>
    %70 = arith.extui %69 : vector<8x8xi1> to vector<8x8xi32>
    %71 = arith.sitofp %70 : vector<8x8xi32> to vector<8x8xf32>
    %cst_34 = arith.constant 1.000000e+00 : f32
    %72 = vector.broadcast %cst_34 : f32 to vector<8x8xf32>
    %73 = arith.cmpf oge, %29, %72 : vector<8x8xf32>
    %cst_35 = arith.constant 1.66666663 : f32
    %74 = vector.broadcast %cst_35 : f32 to vector<8x8xf32>
    %75 = arith.cmpf olt, %29, %74 : vector<8x8xf32>
    %76 = arith.andi %73, %75 : vector<8x8xi1>
    %77 = arith.extui %76 : vector<8x8xi1> to vector<8x8xi32>
    %78 = arith.sitofp %77 : vector<8x8xi32> to vector<8x8xf32>
    %cst_36 = arith.constant 1.66666663 : f32
    %79 = vector.broadcast %cst_36 : f32 to vector<8x8xf32>
    %80 = arith.cmpf oge, %29, %79 : vector<8x8xf32>
    %cst_37 = arith.constant 2.33333325 : f32
    %81 = vector.broadcast %cst_37 : f32 to vector<8x8xf32>
    %82 = arith.cmpf olt, %29, %81 : vector<8x8xf32>
    %83 = arith.andi %80, %82 : vector<8x8xi1>
    %84 = arith.extui %83 : vector<8x8xi1> to vector<8x8xi32>
    %85 = arith.sitofp %84 : vector<8x8xi32> to vector<8x8xf32>
    %cst_38 = arith.constant 2.33333325 : f32
    %86 = vector.broadcast %cst_38 : f32 to vector<8x8xf32>
    %87 = arith.cmpf oge, %29, %86 : vector<8x8xf32>
    %cst_39 = arith.constant 3.000000e+00 : f32
    %88 = vector.broadcast %cst_39 : f32 to vector<8x8xf32>
    %89 = arith.cmpf olt, %29, %88 : vector<8x8xf32>
    %90 = arith.andi %87, %89 : vector<8x8xi1>
    %91 = arith.extui %90 : vector<8x8xi1> to vector<8x8xi32>
    %92 = arith.sitofp %91 : vector<8x8xi32> to vector<8x8xf32>
    %cst_40 = arith.constant -3.000000e+00 : f32
    %93 = vector.broadcast %cst_40 : f32 to vector<8x8xf32>
    %94 = arith.subf %29, %93 : vector<8x8xf32>
    %cst_41 = arith.constant 1.500000e+00 : f32
    %95 = vector.broadcast %cst_41 : f32 to vector<8x8xf32>
    %96 = arith.mulf %94, %95 : vector<8x8xf32>
    %97 = arith.mulf %96, %36 : vector<8x8xf32>
    %cst_42 = arith.constant -1.66666663 : f32
    %98 = vector.broadcast %cst_42 : f32 to vector<8x8xf32>
    %99 = arith.subf %98, %29 : vector<8x8xf32>
    %cst_43 = arith.constant 1.500000e+00 : f32
    %100 = vector.broadcast %cst_43 : f32 to vector<8x8xf32>
    %101 = arith.mulf %99, %100 : vector<8x8xf32>
    %102 = arith.mulf %101, %43 : vector<8x8xf32>
    %103 = arith.addf %97, %102 : vector<8x8xf32>
    %cst_44 = arith.constant -2.33333325 : f32
    %104 = vector.broadcast %cst_44 : f32 to vector<8x8xf32>
    %105 = arith.subf %29, %104 : vector<8x8xf32>
    %cst_45 = arith.constant 1.500000e+00 : f32
    %106 = vector.broadcast %cst_45 : f32 to vector<8x8xf32>
    %107 = arith.mulf %105, %106 : vector<8x8xf32>
    %108 = arith.mulf %107, %43 : vector<8x8xf32>
    %cst_46 = arith.constant -1.000000e+00 : f32
    %109 = vector.broadcast %cst_46 : f32 to vector<8x8xf32>
    %110 = arith.subf %109, %29 : vector<8x8xf32>
    %cst_47 = arith.constant 1.500000e+00 : f32
    %111 = vector.broadcast %cst_47 : f32 to vector<8x8xf32>
    %112 = arith.mulf %110, %111 : vector<8x8xf32>
    %113 = arith.mulf %112, %50 : vector<8x8xf32>
    %114 = arith.addf %108, %113 : vector<8x8xf32>
    %cst_48 = arith.constant -1.66666663 : f32
    %115 = vector.broadcast %cst_48 : f32 to vector<8x8xf32>
    %116 = arith.subf %29, %115 : vector<8x8xf32>
    %cst_49 = arith.constant 1.500000e+00 : f32
    %117 = vector.broadcast %cst_49 : f32 to vector<8x8xf32>
    %118 = arith.mulf %116, %117 : vector<8x8xf32>
    %119 = arith.mulf %118, %50 : vector<8x8xf32>
    %cst_50 = arith.constant -0.333333343 : f32
    %120 = vector.broadcast %cst_50 : f32 to vector<8x8xf32>
    %121 = arith.subf %120, %29 : vector<8x8xf32>
    %cst_51 = arith.constant 1.500000e+00 : f32
    %122 = vector.broadcast %cst_51 : f32 to vector<8x8xf32>
    %123 = arith.mulf %121, %122 : vector<8x8xf32>
    %124 = arith.mulf %123, %57 : vector<8x8xf32>
    %125 = arith.addf %119, %124 : vector<8x8xf32>
    %cst_52 = arith.constant -1.000000e+00 : f32
    %126 = vector.broadcast %cst_52 : f32 to vector<8x8xf32>
    %127 = arith.subf %29, %126 : vector<8x8xf32>
    %cst_53 = arith.constant 1.500000e+00 : f32
    %128 = vector.broadcast %cst_53 : f32 to vector<8x8xf32>
    %129 = arith.mulf %127, %128 : vector<8x8xf32>
    %130 = arith.mulf %129, %57 : vector<8x8xf32>
    %cst_54 = arith.constant 0.333333343 : f32
    %131 = vector.broadcast %cst_54 : f32 to vector<8x8xf32>
    %132 = arith.subf %131, %29 : vector<8x8xf32>
    %cst_55 = arith.constant 1.500000e+00 : f32
    %133 = vector.broadcast %cst_55 : f32 to vector<8x8xf32>
    %134 = arith.mulf %132, %133 : vector<8x8xf32>
    %135 = arith.mulf %134, %64 : vector<8x8xf32>
    %136 = arith.addf %130, %135 : vector<8x8xf32>
    %cst_56 = arith.constant -0.333333343 : f32
    %137 = vector.broadcast %cst_56 : f32 to vector<8x8xf32>
    %138 = arith.subf %29, %137 : vector<8x8xf32>
    %cst_57 = arith.constant 1.500000e+00 : f32
    %139 = vector.broadcast %cst_57 : f32 to vector<8x8xf32>
    %140 = arith.mulf %138, %139 : vector<8x8xf32>
    %141 = arith.mulf %140, %64 : vector<8x8xf32>
    %cst_58 = arith.constant 1.000000e+00 : f32
    %142 = vector.broadcast %cst_58 : f32 to vector<8x8xf32>
    %143 = arith.subf %142, %29 : vector<8x8xf32>
    %cst_59 = arith.constant 1.500000e+00 : f32
    %144 = vector.broadcast %cst_59 : f32 to vector<8x8xf32>
    %145 = arith.mulf %143, %144 : vector<8x8xf32>
    %146 = arith.mulf %145, %71 : vector<8x8xf32>
    %147 = arith.addf %141, %146 : vector<8x8xf32>
    %cst_60 = arith.constant 0.333333343 : f32
    %148 = vector.broadcast %cst_60 : f32 to vector<8x8xf32>
    %149 = arith.subf %29, %148 : vector<8x8xf32>
    %cst_61 = arith.constant 1.500000e+00 : f32
    %150 = vector.broadcast %cst_61 : f32 to vector<8x8xf32>
    %151 = arith.mulf %149, %150 : vector<8x8xf32>
    %152 = arith.mulf %151, %71 : vector<8x8xf32>
    %cst_62 = arith.constant 1.66666663 : f32
    %153 = vector.broadcast %cst_62 : f32 to vector<8x8xf32>
    %154 = arith.subf %153, %29 : vector<8x8xf32>
    %cst_63 = arith.constant 1.500000e+00 : f32
    %155 = vector.broadcast %cst_63 : f32 to vector<8x8xf32>
    %156 = arith.mulf %154, %155 : vector<8x8xf32>
    %157 = arith.mulf %156, %78 : vector<8x8xf32>
    %158 = arith.addf %152, %157 : vector<8x8xf32>
    %cst_64 = arith.constant 1.000000e+00 : f32
    %159 = vector.broadcast %cst_64 : f32 to vector<8x8xf32>
    %160 = arith.subf %29, %159 : vector<8x8xf32>
    %cst_65 = arith.constant 1.500000e+00 : f32
    %161 = vector.broadcast %cst_65 : f32 to vector<8x8xf32>
    %162 = arith.mulf %160, %161 : vector<8x8xf32>
    %163 = arith.mulf %162, %78 : vector<8x8xf32>
    %cst_66 = arith.constant 2.33333325 : f32
    %164 = vector.broadcast %cst_66 : f32 to vector<8x8xf32>
    %165 = arith.subf %164, %29 : vector<8x8xf32>
    %cst_67 = arith.constant 1.500000e+00 : f32
    %166 = vector.broadcast %cst_67 : f32 to vector<8x8xf32>
    %167 = arith.mulf %165, %166 : vector<8x8xf32>
    %168 = arith.mulf %167, %85 : vector<8x8xf32>
    %169 = arith.addf %163, %168 : vector<8x8xf32>
    %cst_68 = arith.constant 1.66666663 : f32
    %170 = vector.broadcast %cst_68 : f32 to vector<8x8xf32>
    %171 = arith.subf %29, %170 : vector<8x8xf32>
    %cst_69 = arith.constant 1.500000e+00 : f32
    %172 = vector.broadcast %cst_69 : f32 to vector<8x8xf32>
    %173 = arith.mulf %171, %172 : vector<8x8xf32>
    %174 = arith.mulf %173, %85 : vector<8x8xf32>
    %cst_70 = arith.constant 3.000000e+00 : f32
    %175 = vector.broadcast %cst_70 : f32 to vector<8x8xf32>
    %176 = arith.subf %175, %29 : vector<8x8xf32>
    %cst_71 = arith.constant 1.500000e+00 : f32
    %177 = vector.broadcast %cst_71 : f32 to vector<8x8xf32>
    %178 = arith.mulf %176, %177 : vector<8x8xf32>
    %179 = arith.mulf %178, %92 : vector<8x8xf32>
    %180 = arith.addf %174, %179 : vector<8x8xf32>
    %cst_72 = arith.constant -3.000000e+00 : f32
    %181 = vector.broadcast %cst_72 : f32 to vector<8x8xf32>
    %182 = arith.subf %29, %181 : vector<8x8xf32>
    %cst_73 = arith.constant 7.500000e-01 : f32
    %183 = vector.broadcast %cst_73 : f32 to vector<8x8xf32>
    %184 = arith.mulf %182, %183 : vector<8x8xf32>
    %185 = arith.mulf %184, %103 : vector<8x8xf32>
    %cst_74 = arith.constant -1.000000e+00 : f32
    %186 = vector.broadcast %cst_74 : f32 to vector<8x8xf32>
    %187 = arith.subf %186, %29 : vector<8x8xf32>
    %cst_75 = arith.constant 7.500000e-01 : f32
    %188 = vector.broadcast %cst_75 : f32 to vector<8x8xf32>
    %189 = arith.mulf %187, %188 : vector<8x8xf32>
    %190 = arith.mulf %189, %114 : vector<8x8xf32>
    %191 = arith.addf %185, %190 : vector<8x8xf32>
    %cst_76 = arith.constant -2.33333325 : f32
    %192 = vector.broadcast %cst_76 : f32 to vector<8x8xf32>
    %193 = arith.subf %29, %192 : vector<8x8xf32>
    %cst_77 = arith.constant 7.500000e-01 : f32
    %194 = vector.broadcast %cst_77 : f32 to vector<8x8xf32>
    %195 = arith.mulf %193, %194 : vector<8x8xf32>
    %196 = arith.mulf %195, %114 : vector<8x8xf32>
    %cst_78 = arith.constant -0.333333343 : f32
    %197 = vector.broadcast %cst_78 : f32 to vector<8x8xf32>
    %198 = arith.subf %197, %29 : vector<8x8xf32>
    %cst_79 = arith.constant 7.500000e-01 : f32
    %199 = vector.broadcast %cst_79 : f32 to vector<8x8xf32>
    %200 = arith.mulf %198, %199 : vector<8x8xf32>
    %201 = arith.mulf %200, %125 : vector<8x8xf32>
    %202 = arith.addf %196, %201 : vector<8x8xf32>
    %cst_80 = arith.constant -1.66666663 : f32
    %203 = vector.broadcast %cst_80 : f32 to vector<8x8xf32>
    %204 = arith.subf %29, %203 : vector<8x8xf32>
    %cst_81 = arith.constant 7.500000e-01 : f32
    %205 = vector.broadcast %cst_81 : f32 to vector<8x8xf32>
    %206 = arith.mulf %204, %205 : vector<8x8xf32>
    %207 = arith.mulf %206, %125 : vector<8x8xf32>
    %cst_82 = arith.constant 0.333333343 : f32
    %208 = vector.broadcast %cst_82 : f32 to vector<8x8xf32>
    %209 = arith.subf %208, %29 : vector<8x8xf32>
    %cst_83 = arith.constant 7.500000e-01 : f32
    %210 = vector.broadcast %cst_83 : f32 to vector<8x8xf32>
    %211 = arith.mulf %209, %210 : vector<8x8xf32>
    %212 = arith.mulf %211, %136 : vector<8x8xf32>
    %213 = arith.addf %207, %212 : vector<8x8xf32>
    %cst_84 = arith.constant -1.000000e+00 : f32
    %214 = vector.broadcast %cst_84 : f32 to vector<8x8xf32>
    %215 = arith.subf %29, %214 : vector<8x8xf32>
    %cst_85 = arith.constant 7.500000e-01 : f32
    %216 = vector.broadcast %cst_85 : f32 to vector<8x8xf32>
    %217 = arith.mulf %215, %216 : vector<8x8xf32>
    %218 = arith.mulf %217, %136 : vector<8x8xf32>
    %cst_86 = arith.constant 1.000000e+00 : f32
    %219 = vector.broadcast %cst_86 : f32 to vector<8x8xf32>
    %220 = arith.subf %219, %29 : vector<8x8xf32>
    %cst_87 = arith.constant 7.500000e-01 : f32
    %221 = vector.broadcast %cst_87 : f32 to vector<8x8xf32>
    %222 = arith.mulf %220, %221 : vector<8x8xf32>
    %223 = arith.mulf %222, %147 : vector<8x8xf32>
    %224 = arith.addf %218, %223 : vector<8x8xf32>
    %cst_88 = arith.constant -0.333333343 : f32
    %225 = vector.broadcast %cst_88 : f32 to vector<8x8xf32>
    %226 = arith.subf %29, %225 : vector<8x8xf32>
    %cst_89 = arith.constant 7.500000e-01 : f32
    %227 = vector.broadcast %cst_89 : f32 to vector<8x8xf32>
    %228 = arith.mulf %226, %227 : vector<8x8xf32>
    %229 = arith.mulf %228, %147 : vector<8x8xf32>
    %cst_90 = arith.constant 1.66666663 : f32
    %230 = vector.broadcast %cst_90 : f32 to vector<8x8xf32>
    %231 = arith.subf %230, %29 : vector<8x8xf32>
    %cst_91 = arith.constant 7.500000e-01 : f32
    %232 = vector.broadcast %cst_91 : f32 to vector<8x8xf32>
    %233 = arith.mulf %231, %232 : vector<8x8xf32>
    %234 = arith.mulf %233, %158 : vector<8x8xf32>
    %235 = arith.addf %229, %234 : vector<8x8xf32>
    %cst_92 = arith.constant 0.333333343 : f32
    %236 = vector.broadcast %cst_92 : f32 to vector<8x8xf32>
    %237 = arith.subf %29, %236 : vector<8x8xf32>
    %cst_93 = arith.constant 7.500000e-01 : f32
    %238 = vector.broadcast %cst_93 : f32 to vector<8x8xf32>
    %239 = arith.mulf %237, %238 : vector<8x8xf32>
    %240 = arith.mulf %239, %158 : vector<8x8xf32>
    %cst_94 = arith.constant 2.33333325 : f32
    %241 = vector.broadcast %cst_94 : f32 to vector<8x8xf32>
    %242 = arith.subf %241, %29 : vector<8x8xf32>
    %cst_95 = arith.constant 7.500000e-01 : f32
    %243 = vector.broadcast %cst_95 : f32 to vector<8x8xf32>
    %244 = arith.mulf %242, %243 : vector<8x8xf32>
    %245 = arith.mulf %244, %169 : vector<8x8xf32>
    %246 = arith.addf %240, %245 : vector<8x8xf32>
    %cst_96 = arith.constant 1.000000e+00 : f32
    %247 = vector.broadcast %cst_96 : f32 to vector<8x8xf32>
    %248 = arith.subf %29, %247 : vector<8x8xf32>
    %cst_97 = arith.constant 7.500000e-01 : f32
    %249 = vector.broadcast %cst_97 : f32 to vector<8x8xf32>
    %250 = arith.mulf %248, %249 : vector<8x8xf32>
    %251 = arith.mulf %250, %169 : vector<8x8xf32>
    %cst_98 = arith.constant 3.000000e+00 : f32
    %252 = vector.broadcast %cst_98 : f32 to vector<8x8xf32>
    %253 = arith.subf %252, %29 : vector<8x8xf32>
    %cst_99 = arith.constant 7.500000e-01 : f32
    %254 = vector.broadcast %cst_99 : f32 to vector<8x8xf32>
    %255 = arith.mulf %253, %254 : vector<8x8xf32>
    %256 = arith.mulf %255, %180 : vector<8x8xf32>
    %257 = arith.addf %251, %256 : vector<8x8xf32>
    %cst_100 = arith.constant -3.000000e+00 : f32
    %258 = vector.broadcast %cst_100 : f32 to vector<8x8xf32>
    %259 = arith.subf %29, %258 : vector<8x8xf32>
    %cst_101 = arith.constant 5.000000e-01 : f32
    %260 = vector.broadcast %cst_101 : f32 to vector<8x8xf32>
    %261 = arith.mulf %259, %260 : vector<8x8xf32>
    %262 = arith.mulf %261, %191 : vector<8x8xf32>
    %cst_102 = arith.constant -0.333333343 : f32
    %263 = vector.broadcast %cst_102 : f32 to vector<8x8xf32>
    %264 = arith.subf %263, %29 : vector<8x8xf32>
    %cst_103 = arith.constant 5.000000e-01 : f32
    %265 = vector.broadcast %cst_103 : f32 to vector<8x8xf32>
    %266 = arith.mulf %264, %265 : vector<8x8xf32>
    %267 = arith.mulf %266, %202 : vector<8x8xf32>
    %268 = arith.addf %262, %267 : vector<8x8xf32>
    %cst_104 = arith.constant -2.33333325 : f32
    %269 = vector.broadcast %cst_104 : f32 to vector<8x8xf32>
    %270 = arith.subf %29, %269 : vector<8x8xf32>
    %cst_105 = arith.constant 5.000000e-01 : f32
    %271 = vector.broadcast %cst_105 : f32 to vector<8x8xf32>
    %272 = arith.mulf %270, %271 : vector<8x8xf32>
    %273 = arith.mulf %272, %202 : vector<8x8xf32>
    %cst_106 = arith.constant 0.333333343 : f32
    %274 = vector.broadcast %cst_106 : f32 to vector<8x8xf32>
    %275 = arith.subf %274, %29 : vector<8x8xf32>
    %cst_107 = arith.constant 5.000000e-01 : f32
    %276 = vector.broadcast %cst_107 : f32 to vector<8x8xf32>
    %277 = arith.mulf %275, %276 : vector<8x8xf32>
    %278 = arith.mulf %277, %213 : vector<8x8xf32>
    %279 = arith.addf %273, %278 : vector<8x8xf32>
    %cst_108 = arith.constant -1.66666663 : f32
    %280 = vector.broadcast %cst_108 : f32 to vector<8x8xf32>
    %281 = arith.subf %29, %280 : vector<8x8xf32>
    %cst_109 = arith.constant 5.000000e-01 : f32
    %282 = vector.broadcast %cst_109 : f32 to vector<8x8xf32>
    %283 = arith.mulf %281, %282 : vector<8x8xf32>
    %284 = arith.mulf %283, %213 : vector<8x8xf32>
    %cst_110 = arith.constant 1.000000e+00 : f32
    %285 = vector.broadcast %cst_110 : f32 to vector<8x8xf32>
    %286 = arith.subf %285, %29 : vector<8x8xf32>
    %cst_111 = arith.constant 5.000000e-01 : f32
    %287 = vector.broadcast %cst_111 : f32 to vector<8x8xf32>
    %288 = arith.mulf %286, %287 : vector<8x8xf32>
    %289 = arith.mulf %288, %224 : vector<8x8xf32>
    %290 = arith.addf %284, %289 : vector<8x8xf32>
    %cst_112 = arith.constant -1.000000e+00 : f32
    %291 = vector.broadcast %cst_112 : f32 to vector<8x8xf32>
    %292 = arith.subf %29, %291 : vector<8x8xf32>
    %cst_113 = arith.constant 5.000000e-01 : f32
    %293 = vector.broadcast %cst_113 : f32 to vector<8x8xf32>
    %294 = arith.mulf %292, %293 : vector<8x8xf32>
    %295 = arith.mulf %294, %224 : vector<8x8xf32>
    %cst_114 = arith.constant 1.66666663 : f32
    %296 = vector.broadcast %cst_114 : f32 to vector<8x8xf32>
    %297 = arith.subf %296, %29 : vector<8x8xf32>
    %cst_115 = arith.constant 5.000000e-01 : f32
    %298 = vector.broadcast %cst_115 : f32 to vector<8x8xf32>
    %299 = arith.mulf %297, %298 : vector<8x8xf32>
    %300 = arith.mulf %299, %235 : vector<8x8xf32>
    %301 = arith.addf %295, %300 : vector<8x8xf32>
    %cst_116 = arith.constant -0.333333343 : f32
    %302 = vector.broadcast %cst_116 : f32 to vector<8x8xf32>
    %303 = arith.subf %29, %302 : vector<8x8xf32>
    %cst_117 = arith.constant 5.000000e-01 : f32
    %304 = vector.broadcast %cst_117 : f32 to vector<8x8xf32>
    %305 = arith.mulf %303, %304 : vector<8x8xf32>
    %306 = arith.mulf %305, %235 : vector<8x8xf32>
    %cst_118 = arith.constant 2.33333325 : f32
    %307 = vector.broadcast %cst_118 : f32 to vector<8x8xf32>
    %308 = arith.subf %307, %29 : vector<8x8xf32>
    %cst_119 = arith.constant 5.000000e-01 : f32
    %309 = vector.broadcast %cst_119 : f32 to vector<8x8xf32>
    %310 = arith.mulf %308, %309 : vector<8x8xf32>
    %311 = arith.mulf %310, %246 : vector<8x8xf32>
    %312 = arith.addf %306, %311 : vector<8x8xf32>
    %cst_120 = arith.constant 0.333333343 : f32
    %313 = vector.broadcast %cst_120 : f32 to vector<8x8xf32>
    %314 = arith.subf %29, %313 : vector<8x8xf32>
    %cst_121 = arith.constant 5.000000e-01 : f32
    %315 = vector.broadcast %cst_121 : f32 to vector<8x8xf32>
    %316 = arith.mulf %314, %315 : vector<8x8xf32>
    %317 = arith.mulf %316, %246 : vector<8x8xf32>
    %cst_122 = arith.constant 3.000000e+00 : f32
    %318 = vector.broadcast %cst_122 : f32 to vector<8x8xf32>
    %319 = arith.subf %318, %29 : vector<8x8xf32>
    %cst_123 = arith.constant 5.000000e-01 : f32
    %320 = vector.broadcast %cst_123 : f32 to vector<8x8xf32>
    %321 = arith.mulf %319, %320 : vector<8x8xf32>
    %322 = arith.mulf %321, %257 : vector<8x8xf32>
    %323 = arith.addf %317, %322 : vector<8x8xf32>
    %324 = vector.extract_strided_slice %27 {offsets = [0, 0], sizes = [8, 1], strides = [1, 1]} : vector<8x6xf32> to vector<8x1xf32>
    %325 = vector.broadcast %324 : vector<8x1xf32> to vector<8x8xf32>
    %326 = arith.mulf %268, %325 : vector<8x8xf32>
    %327 = vector.extract_strided_slice %27 {offsets = [0, 1], sizes = [8, 1], strides = [1, 1]} : vector<8x6xf32> to vector<8x1xf32>
    %328 = vector.broadcast %327 : vector<8x1xf32> to vector<8x8xf32>
    %329 = arith.mulf %279, %328 : vector<8x8xf32>
    %330 = arith.addf %326, %329 : vector<8x8xf32>
    %331 = vector.extract_strided_slice %27 {offsets = [0, 2], sizes = [8, 1], strides = [1, 1]} : vector<8x6xf32> to vector<8x1xf32>
    %332 = vector.broadcast %331 : vector<8x1xf32> to vector<8x8xf32>
    %333 = arith.mulf %290, %332 : vector<8x8xf32>
    %334 = arith.addf %330, %333 : vector<8x8xf32>
    %335 = vector.extract_strided_slice %27 {offsets = [0, 3], sizes = [8, 1], strides = [1, 1]} : vector<8x6xf32> to vector<8x1xf32>
    %336 = vector.broadcast %335 : vector<8x1xf32> to vector<8x8xf32>
    %337 = arith.mulf %301, %336 : vector<8x8xf32>
    %338 = arith.addf %334, %337 : vector<8x8xf32>
    %339 = vector.extract_strided_slice %27 {offsets = [0, 4], sizes = [8, 1], strides = [1, 1]} : vector<8x6xf32> to vector<8x1xf32>
    %340 = vector.broadcast %339 : vector<8x1xf32> to vector<8x8xf32>
    %341 = arith.mulf %312, %340 : vector<8x8xf32>
    %342 = arith.addf %338, %341 : vector<8x8xf32>
    %343 = vector.extract_strided_slice %27 {offsets = [0, 5], sizes = [8, 1], strides = [1, 1]} : vector<8x6xf32> to vector<8x1xf32>
    %344 = vector.broadcast %343 : vector<8x1xf32> to vector<8x8xf32>
    %345 = arith.mulf %323, %344 : vector<8x8xf32>
    %346 = arith.addf %342, %345 : vector<8x8xf32>
    %347 = arith.negf %29 : vector<8x8xf32>
    %348 = math.exp %347 : vector<8x8xf32>
    %cst_124 = arith.constant 1.000000e+00 : f32
    %349 = vector.broadcast %cst_124 : f32 to vector<8x8xf32>
    %350 = arith.addf %349, %348 : vector<8x8xf32>
    %351 = arith.divf %349, %350 : vector<8x8xf32>
    %352 = arith.mulf %29, %351 : vector<8x8xf32>
    %353 = arith.addf %352, %346 : vector<8x8xf32>
    %354 = vector.broadcast %28 : vector<8x1xf32> to vector<8x8xf32>
    %355 = arith.mulf %354, %353 : vector<8x8xf32>
    %c0_125 = arith.constant 0 : index
    %c0_126 = arith.constant 0 : index
    %356 = vector.load %arg5[%c0_125, %c0_126] : memref<8x8xf32, #tpu.memory_space<vmem>>, vector<8x8xf32>
    tpu.vector_store %arg5[%c0_125, %c0_126], %355 {strides = array<i32>} : memref<8x8xf32, #tpu.memory_space<vmem>>, vector<8x8xf32>,
    return
  }
}

</mosaic_0001>

<bundles_post_ra>
// kernel: simplenet_forward.1
= control target key start
LH: loop header
LB: loop body
LE: loop exit
PB: predicated region body
PF: predicated region fallthrough
CT: control target
= control target key end

     0   :  { %10 = vsyncpa [#allocation3], 0  ;;  %s1217_s0 = inlined_call_operand.vmem [shape: f32[8,128], index: 0, kind: input, shape index: {}]   ;;  %s1218_s1 = inlined_call_operand.vmem [shape: f32[8,8], index: 1, kind: input, shape index: {}]   ;;  %s1219_s2 = inlined_call_operand.hbm [shape: f32[128,512], index: 2, kind: input, shape index: {}]   ;;  %s1220_s3 = inlined_call_operand.vmem [shape: f32[256,128], index: 3, kind: input, shape index: {}]   ;;  %s1221_s4 = inlined_call_operand.vmem [shape: f32[1,640], index: 4, kind: input, shape index: {}]   ;;  %s1222_s5 = inlined_call_operand.hbm [shape: f32[8,8], index: 5, kind: output, shape index: {}]  }
   0x1   :  { %11 = vsyncpa [#allocation4], 0  ;;  %s912_s18 = smov [#allocation2]  }
   0x2   :  { %s21_s19 = sshll.u32 %s912_s18, 4  ;;  %s22_s19 = int_to_ptr.vmem [resolvable:$true] %s21_s19 }
   0x3   :  { %s876_s20 = scalar_lea.vmem %s22_s19, 8192  ;;  %p881_p1 = scmp.lt.s32.totalorder %s22_s19, %s22_s19 }
   0x4   :  { %p877_p0 = scmp.ne.s32.totalorder %s22_s19, %s876_s20  ;;  %p882_p2 = scmp.lt.s32.totalorder %s876_s20, %s876_s20 }
   0x6   :  { %p883_p3 = por %p882_p2, %p881_p1 }
   0x8   :  { %p884_p4 = pnand %p883_p3, %p877_p0 }
   0xa   :  { %887 = shalt.err (!%p884_p4)
}
   0xb   :  { %s913_s21 = smov 512   ;;  %s914_s22 = smov 32  }
   0xc   :  { %27 = dma.hbm_to_vmem [thread:$0]  %s1219_s2, 8192, %s22_s19, [#allocation3], %s913_s21, %s913_s21, %s914_s22  }
   0xd   :  { %908 = dma.done.wait [#allocation3], 8192  }
   0xe   :  { %909 = vsyncadd [#allocation3], 4294959104  ;;  %v915_v0 = vmov 0.0   ;;  %vm916_vm0 = vmmov 0   ;;  %v50_v1 = vld [vmem:[#allocation2 + $0x1e0] sm:$0xff]  ;;  %v66_v5 = vld [vmem:[#allocation2 + $0x1e8] sm:$0xff] }
   0xf   :  { %773 = vmatprep.subr.mxu0 %v915_v0  ;;  %805 = vmatprep.mubr.msk.f32.mxu0 %vm916_vm0, %v915_v0  ;;  %v49_v2 = vld [vmem:[#allocation2 + $0x1c0] sm:$0xff]  ;;  %v65_v7 = vld [vmem:[#allocation2 + $0x1c8] sm:$0xff]  ;;  %v98_v34 = vld [vmem:[#allocation2 + $0x1f8] sm:$0xff] }
  0x10   :  { %808 = vmatprep.subr.mxu1 %v915_v0  ;;  %840 = vmatprep.mubr.msk.f32.mxu1 %vm916_vm0, %v915_v0  ;;  %v48_v3 = vld [vmem:[#allocation2 + $0x1a0] sm:$0xff]  ;;  %v64_v8 = vld [vmem:[#allocation2 + $0x1a8] sm:$0xff]  ;;  %v97_v35 = vld [vmem:[#allocation2 + $0x1f0] sm:$0xff] }
  0x11   :  { %774 = vmatpush3.msra.mxu0 %v50_v1  ;;  %v47_v4 = vld [vmem:[#allocation2 + $0x180] sm:$0xff]  ;;  %809 = vmatpush3.msra.mxu1 %v66_v5  ;;  %v63_v10 = vld [vmem:[#allocation2 + $0x188] sm:$0xff]  ;;  %v96_v36 = vld [vmem:[#allocation2 + $0x1d8] sm:$0xff] }
  0x12   :  { %775 = vmatprep.subr.mxu0 %v915_v0  ;;  %v46_v6 = vld [vmem:[#allocation2 + $0x160] sm:$0xff]  ;;  %810 = vmatprep.subr.mxu1 %v915_v0  ;;  %v62_v12 = vld [vmem:[#allocation2 + $0x168] sm:$0xff]  ;;  %v95_v37 = vld [vmem:[#allocation2 + $0x1d0] sm:$0xff] }
  0x13   :  { %776 = vmatpush3.msra.mxu0 %v49_v2  ;;  %v45_v9 = vld [vmem:[#allocation2 + $0x140] sm:$0xff]  ;;  %811 = vmatpush3.msra.mxu1 %v65_v7  ;;  %v61_v14 = vld [vmem:[#allocation2 + $0x148] sm:$0xff]  ;;  %v94_v38 = vld [vmem:[#allocation2 + $0x1b8] sm:$0xff] }
  0x14   :  { %777 = vmatprep.subr.mxu0 %v915_v0  ;;  %812 = vmatprep.subr.mxu1 %v915_v0  ;;  %v44_v11 = vld [vmem:[#allocation2 + $0x120] sm:$0xff]  ;;  %v60_v16 = vld [vmem:[#allocation2 + $0x128] sm:$0xff]  ;;  %v93_v39 = vld [vmem:[#allocation2 + $0x1b0] sm:$0xff] }
  0x15   :  { %778 = vmatpush3.msra.mxu0 %v48_v3  ;;  %813 = vmatpush3.msra.mxu1 %v64_v8  ;;  %v43_v13 = vld [vmem:[#allocation2 + $0x100] sm:$0xff]  ;;  %v59_v18 = vld [vmem:[#allocation2 + $0x108] sm:$0xff]  ;;  %v92_v40 = vld [vmem:[#allocation2 + $0x198] sm:$0xff] }
  0x16   :  { %779 = vmatprep.subr.mxu0 %v915_v0  ;;  %814 = vmatprep.subr.mxu1 %v915_v0  ;;  %v42_v15 = vld [vmem:[#allocation2 + $0xe0] sm:$0xff]  ;;  %v58_v20 = vld [vmem:[#allocation2 + $0xe8] sm:$0xff]  ;;  %v91_v41 = vld [vmem:[#allocation2 + $0x190] sm:$0xff] }
  0x17   :  { %780 = vmatpush3.msra.mxu0 %v47_v4  ;;  %815 = vmatpush3.msra.mxu1 %v63_v10  ;;  %v41_v17 = vld [vmem:[#allocation2 + $0xc0] sm:$0xff]  ;;  %v57_v22 = vld [vmem:[#allocation2 + $0xc8] sm:$0xff]  ;;  %v90_v42 = vld [vmem:[#allocation2 + $0x178] sm:$0xff] }
  0x18   :  { %781 = vmatprep.subr.mxu0 %v915_v0  ;;  %816 = vmatprep.subr.mxu1 %v915_v0  ;;  %v40_v19 = vld [vmem:[#allocation2 + $0xa0] sm:$0xff]  ;;  %v56_v24 = vld [vmem:[#allocation2 + $0xa8] sm:$0xff]  ;;  %v89_v43 = vld [vmem:[#allocation2 + $0x170] sm:$0xff] }
  0x19   :  { %782 = vmatpush3.msra.mxu0 %v46_v6  ;;  %817 = vmatpush3.msra.mxu1 %v62_v12  ;;  %v39_v21 = vld [vmem:[#allocation2 + $0x80] sm:$0xff]  ;;  %v55_v26 = vld [vmem:[#allocation2 + $0x88] sm:$0xff]  ;;  %v88_v44 = vld [vmem:[#allocation2 + $0x158] sm:$0xff] }
  0x1a   :  { %783 = vmatprep.subr.mxu0 %v915_v0  ;;  %818 = vmatprep.subr.mxu1 %v915_v0  ;;  %v38_v23 = vld [vmem:[#allocation2 + $0x60] sm:$0xff]  ;;  %v54_v28 = vld [vmem:[#allocation2 + $0x68] sm:$0xff]  ;;  %v87_v45 = vld [vmem:[#allocation2 + $0x150] sm:$0xff] }
  0x1b   :  { %784 = vmatpush3.msra.mxu0 %v45_v9  ;;  %819 = vmatpush3.msra.mxu1 %v61_v14  ;;  %v37_v25 = vld [vmem:[#allocation2 + $0x40] sm:$0xff]  ;;  %v53_v31 = vld [vmem:[#allocation2 + $0x48] sm:$0xff]  ;;  %v86_v46 = vld [vmem:[#allocation2 + $0x138] sm:$0xff] }
  0x1c   :  { %785 = vmatprep.subr.mxu0 %v915_v0  ;;  %820 = vmatprep.subr.mxu1 %v915_v0  ;;  %v36_v27 = vld [vmem:[#allocation2 + $0x20] sm:$0xff]  ;;  %v52_v32 = vld [vmem:[#allocation2 + $0x28] sm:$0xff]  ;;  %v85_v47 = vld [vmem:[#allocation2 + $0x130] sm:$0xff] }
  0x1d   :  { %786 = vmatpush3.msra.mxu0 %v44_v11  ;;  %821 = vmatpush3.msra.mxu1 %v60_v16  ;;  %v35_v29 = vld [vmem:[#allocation2] sm:$0xff]  ;;  %v51_v33 = vld [vmem:[#allocation2 + $0x8] sm:$0xff]  ;;  %v84_v48 = vld [vmem:[#allocation2 + $0x118] sm:$0xff] }
  0x1e   :  { %787 = vmatprep.subr.mxu0 %v915_v0  ;;  %822 = vmatprep.subr.mxu1 %v915_v0  ;;  %v103_v30 = vld [vmem:[%s1217_s0] sm:$0xff]  ;;  %v83_v49 = vld [vmem:[#allocation2 + $0x110] sm:$0xff]  ;;  %v82_v50 = vld [vmem:[#allocation2 + $0xf8] sm:$0xff] }
  0x1f   :  { %788 = vmatpush3.msra.mxu0 %v43_v13  ;;  %823 = vmatpush3.msra.mxu1 %v59_v18  ;;  %v81_v51 = vld [vmem:[#allocation2 + $0xf0] sm:$0xff]  ;;  %v80_v52 = vld [vmem:[#allocation2 + $0xd8] sm:$0xff]  ;;  %v683_v61 = vld [vmem:[%s1221_s4] ss:$0 sm:$0xff] }
  0x20   :  { %789 = vmatprep.subr.mxu0 %v915_v0  ;;  %824 = vmatprep.subr.mxu1 %v915_v0  ;;  %v79_v53 = vld [vmem:[#allocation2 + $0xd0] sm:$0xff]  ;;  %v78_v54 = vld [vmem:[#allocation2 + $0xb8] sm:$0xff]  ;;  %v371_v12 = vld [vmem:[%s1220_s3 + $0xe8] sm:$0xff] }
  0x21   :  { %790 = vmatpush3.msra.mxu0 %v42_v15  ;;  %825 = vmatpush3.msra.mxu1 %v58_v20  ;;  %v77_v55 = vld [vmem:[#allocation2 + $0xb0] sm:$0xff]  ;;  %v76_v56 = vld [vmem:[#allocation2 + $0x98] sm:$0xff]  ;;  %v355_v13 = vld [vmem:[%s1220_s3 + $0x68] sm:$0xff] }
  0x22   :  { %791 = vmatprep.subr.mxu0 %v915_v0  ;;  %826 = vmatprep.subr.mxu1 %v915_v0  ;;  %v75_v57 = vld [vmem:[#allocation2 + $0x90] sm:$0xff]  ;;  %v74_v58 = vld [vmem:[#allocation2 + $0x78] sm:$0xff]  ;;  %v370_v14 = vld [vmem:[%s1220_s3 + $0xe0] sm:$0xff] }
  0x23   :  { %792 = vmatpush3.msra.mxu0 %v41_v17  ;;  %827 = vmatpush3.msra.mxu1 %v57_v22  ;;  %v73_v59 = vld [vmem:[#allocation2 + $0x70] sm:$0xff]  ;;  %v72_v60 = vld [vmem:[#allocation2 + $0x58] sm:$0xff]  ;;  %v354_v15 = vld [vmem:[%s1220_s3 + $0x60] sm:$0xff] }
  0x24   :  { %793 = vmatprep.subr.mxu0 %v915_v0  ;;  %828 = vmatprep.subr.mxu1 %v915_v0  ;;  %v71_v3 = vld [vmem:[#allocation2 + $0x50] sm:$0xff]  ;;  %v70_v4 = vld [vmem:[#allocation2 + $0x38] sm:$0xff]  ;;  %v367_v20 = vld [vmem:[%s1220_s3 + $0xc8] sm:$0xff] }
  0x25   :  { %794 = vmatpush3.msra.mxu0 %v40_v19  ;;  %829 = vmatpush3.msra.mxu1 %v56_v24  ;;  %v69_v5 = vld [vmem:[#allocation2 + $0x30] sm:$0xff]  ;;  %v68_v6 = vld [vmem:[#allocation2 + $0x18] sm:$0xff]  ;;  %v366_v22 = vld [vmem:[%s1220_s3 + $0xc0] sm:$0xff] }
  0x26   :  { %795 = vmatprep.subr.mxu0 %v915_v0  ;;  %830 = vmatprep.subr.mxu1 %v915_v0  ;;  %v67_v7 = vld [vmem:[#allocation2 + $0x10] sm:$0xff]  ;;  %v373_v8 = vld [vmem:[%s1220_s3 + $0xf8] sm:$0xff] }
  0x27   :  { %796 = vmatpush3.msra.mxu0 %v39_v21  ;;  %831 = vmatpush3.msra.mxu1 %v55_v26  ;;  %v357_v9 = vld [vmem:[%s1220_s3 + $0x78] sm:$0xff]  ;;  %v372_v10 = vld [vmem:[%s1220_s3 + $0xf0] sm:$0xff]  ;;  %v351_v21 = vld [vmem:[%s1220_s3 + $0x48] sm:$0xff] }
  0x28   :  { %797 = vmatprep.subr.mxu0 %v915_v0  ;;  %832 = vmatprep.subr.mxu1 %v915_v0  ;;  %v356_v11 = vld [vmem:[%s1220_s3 + $0x70] sm:$0xff]  ;;  %v369_v16 = vld [vmem:[%s1220_s3 + $0xd8] sm:$0xff] }
  0x29   :  { %798 = vmatpush3.msra.mxu0 %v38_v23  ;;  %833 = vmatpush3.msra.mxu1 %v54_v28  ;;  %v353_v17 = vld [vmem:[%s1220_s3 + $0x58] sm:$0xff]  ;;  %v368_v18 = vld [vmem:[%s1220_s3 + $0xd0] sm:$0xff]  ;;  %v350_v23 = vld [vmem:[%s1220_s3 + $0x40] sm:$0xff] }
  0x2a   :  { %799 = vmatprep.subr.mxu0 %v915_v0  ;;  %834 = vmatprep.subr.mxu1 %v915_v0  ;;  %v352_v19 = vld [vmem:[%s1220_s3 + $0x50] sm:$0xff]  ;;  %v365_v24 = vld [vmem:[%s1220_s3 + $0xb8] sm:$0xff]  ;;  %v363_v28 = vld [vmem:[%s1220_s3 + $0xa8] sm:$0xff] }
  0x2b   :  { %800 = vmatpush3.msra.mxu0 %v37_v25  ;;  %835 = vmatpush3.msra.mxu1 %v53_v31  ;;  %v349_v25 = vld [vmem:[%s1220_s3 + $0x38] sm:$0xff]  ;;  %v364_v26 = vld [vmem:[%s1220_s3 + $0xb0] sm:$0xff]  ;;  %v346_v31 = vld [vmem:[%s1220_s3 + $0x20] sm:$0xff] }
  0x2c   :  { %801 = vmatprep.subr.mxu0 %v915_v0  ;;  %836 = vmatprep.subr.mxu1 %v915_v0 }
  0x2d   :  { %802 = vmatpush3.msra.mxu0 %v36_v27  ;;  %837 = vmatpush3.msra.mxu1 %v52_v32  ;;  %v348_v27 = vld [vmem:[%s1220_s3 + $0x30] sm:$0xff]  ;;  %v684_v32 = vld [vmem:[%s1221_s4 + $0x1] ss:$0 sm:$0xff] }
  0x2e   :  { %803 = vmatprep.subr.mxu0 %v915_v0  ;;  %838 = vmatprep.subr.mxu1 %v915_v0 }
  0x2f   :  { %804 = vmatpush3.msra.mxu0 %v35_v29  ;;  %839 = vmatpush3.msra.mxu1 %v51_v33  ;;  %v347_v29 = vld [vmem:[%s1220_s3 + $0x28] sm:$0xff] }
  0x30   :  { %806 = vmatmul.mubr.f32.vlgmr.msra.gmra.mxu0 %v103_v30  ;;  %269 = vmatprep.subr.mxu0 %v98_v34  ;;  %v362_v30 = vld [vmem:[%s1220_s3 + $0xa0] sm:$0xff] }
  0x31   :  { %333 = vmatprep.mubr.f32.mxu0 %v915_v0  ;;  %270 = vmatpush1.msra.mxu0 %v97_v35 }
  0x32   :  { %271 = vmatprep.subr.mxu0 %v96_v36  ;;  %738 = vmatprep.subr.mxu1 %v373_v8 }
  0x33   :  { %272 = vmatpush1.msra.mxu0 %v95_v37  ;;  %v361_v37 = vld [vmem:[%s1220_s3 + $0x98] sm:$0xff] }
  0x34   :  { %273 = vmatprep.subr.mxu0 %v94_v38  ;;  %v345_v38 = vld [vmem:[%s1220_s3 + $0x18] sm:$0xff] }
  0x35   :  { %274 = vmatpush1.msra.mxu0 %v93_v39  ;;  %v360_v39 = vld [vmem:[%s1220_s3 + $0x90] sm:$0xff] }
  0x36   :  { %275 = vmatprep.subr.mxu0 %v92_v40  ;;  %v344_v40 = vld [vmem:[%s1220_s3 + $0x10] sm:$0xff] }
  0x37   :  { %276 = vmatpush1.msra.mxu0 %v91_v41  ;;  %v359_v41 = vld [vmem:[%s1220_s3 + $0x88] sm:$0xff] }
  0x38   :  { %277 = vmatprep.subr.mxu0 %v90_v42  ;;  %v343_v42 = vld [vmem:[%s1220_s3 + $0x8] sm:$0xff] }
  0x39   :  { %278 = vmatpush1.msra.mxu0 %v89_v43  ;;  %v358_v43 = vld [vmem:[%s1220_s3 + $0x80] sm:$0xff] }
  0x3a   :  { %279 = vmatprep.subr.mxu0 %v88_v44  ;;  %v342_v44 = vld [vmem:[%s1220_s3] sm:$0xff] }
  0x3b   :  { %280 = vmatpush1.msra.mxu0 %v87_v45  ;;  %v259_v45 = vlaneseq }
  0x3c   :  { %281 = vmatprep.subr.mxu0 %v86_v46 }
  0x3d   :  { %282 = vmatpush1.msra.mxu0 %v85_v47  ;;  %v260_v46 = vshrl.u32 %v259_v45, 7 }
  0x3e   :  { %283 = vmatprep.subr.mxu0 %v84_v48  ;;  %v101_v48 = vld [vmem:[%s1221_s4 + $0x2] sm:$0x3] }
  0x3f   :  { %284 = vmatpush1.msra.mxu0 %v83_v49  ;;  %v261_v47 = vsub.s32 0, %v260_v46  ;;  %v265_v49 = vsub.s32 1, %v260_v46 }
  0x40   :  { %285 = vmatprep.subr.mxu0 %v82_v50 }
  0x41   :  { %286 = vmatpush1.msra.mxu0 %v81_v51  ;;  %v262_v50 = vrot.slane %v101_v48, %v261_v47  ;;  %v266_v51 = vrot.slane %v101_v48, %v265_v49 }
  0x42   :  { %287 = vmatprep.subr.mxu0 %v80_v52 }
  0x43   :  { %288 = vmatpush1.msra.mxu0 %v79_v53 }
  0x44   :  { %289 = vmatprep.subr.mxu0 %v78_v54 }
  0x45   :  { %290 = vmatpush1.msra.mxu0 %v77_v55 }
  0x46   :  { %291 = vmatprep.subr.mxu0 %v76_v56 }
  0x47   :  { %292 = vmatpush1.msra.mxu0 %v75_v57 }
  0x48   :  { %293 = vmatprep.subr.mxu0 %v74_v58  ;;  %v917_v58 = vmov 2  }
  0x49   :  { %294 = vmatpush1.msra.mxu0 %v73_v59  ;;  %858 = vset.pattern.permute.xlu1 %v917_v58  ;;  %v918_v59 = vmov 0  }
  0x4a   :  { %295 = vmatprep.subr.mxu0 %v72_v60  ;;  %856 = vset.pattern.permute.xlu0 %v918_v59 }
  0x4b   :  { %296 = vmatpush1.msra.mxu0 %v71_v3  ;;  %v920_v3 = vmov 1  }
  0x4c   :  { %297 = vmatprep.subr.mxu0 %v70_v4  ;;  %v921_v4 = vmov 4  }
  0x4d   :  { %298 = vmatpush1.msra.mxu0 %v69_v5  ;;  %v922_v5 = vmov 5  }
  0x4e   :  { %299 = vmatprep.subr.mxu0 %v68_v6  ;;  %v923_v6 = vmov 6  }
  0x4f   :  { %300 = vmatpush1.msra.mxu0 %v67_v7  ;;  %v1107_v7 = vld [vmem:[%s1218_s1] sm:$0xff]  ;;  %s924_s1 = smov [#allocation5]  }
  0x50   :  { %vm461_vm1 = vcmp.ge.f32.partialorder %v1107_v7, -1.6666666  ;;  %vm462_vm2 = vcmp.lt.f32.partialorder %v1107_v7, -1.0  ;;  %vm466_vm3 = vcmp.ge.f32.partialorder %v1107_v7, -1.0  ;;  %vm467_vm4 = vcmp.lt.f32.partialorder %v1107_v7, -0.33333334 }
  0x51   :  { %vm463_vm5 = vmand %vm461_vm1, %vm462_vm2  ;;  %v1114_v8 = vadd.f32 1.6666666, %v1107_v7  ;;  %vm471_vm7 = vcmp.ge.f32.partialorder %v1107_v7, -0.33333334  ;;  %vm472_vm8 = vcmp.lt.f32.partialorder %v1107_v7, 0.33333334 }
  0x52   :  { %vm468_vm6 = vmand %vm466_vm3, %vm467_vm4  ;;  %vm476_vm9 = vcmp.ge.f32.partialorder %v1107_v7, 0.33333334  ;;  %vm477_vm10 = vcmp.lt.f32.partialorder %v1107_v7, 1.0  ;;  %vm451_vm13 = vcmp.ge.f32.partialorder %v1107_v7, -3.0  ;;  %vm452_vm14 = vcmp.lt.f32.partialorder %v1107_v7, -2.3333333 }
  0x53   :  { %vm473_vm11 = vmand %vm471_vm7, %vm472_vm8  ;;  %vm456_vm15 = vcmp.ge.f32.partialorder %v1107_v7, -2.3333333  ;;  %vm457_vm0 = vcmp.lt.f32.partialorder %v1107_v7, -1.6666666  ;;  %vm481_vm3 = vcmp.ge.f32.partialorder %v1107_v7, 1.0  ;;  %v701_v45 = vadd.f32 -1.0, %v1107_v7 }
  0x54   :  { %vm478_vm12 = vmand %vm476_vm9, %vm477_vm10  ;;  %vm482_vm4 = vcmp.lt.f32.partialorder %v1107_v7, 1.6666666  ;;  %v1175_v46 = vsub.f32 2.3333333, %v1107_v7  ;;  %vm491_vm9 = vcmp.ge.f32.partialorder %v1107_v7, 2.3333333 }
  0x55   :  { %vm453_vm1 = vmand %vm451_vm13, %vm452_vm14  ;;  %vm492_vm10 = vcmp.lt.f32.partialorder %v1107_v7, 3.0  ;;  %v539_v59 = vmul.f32 1.5, %v701_v45  ;;  %s674_s18 = sshll.u32 %s924_s1, 4  ;;  %s675_s18 = int_to_ptr.vmem [resolvable:$true] %s674_s18 }
  0x56   :  { %vm458_vm2 = vmand %vm456_vm15, %vm457_vm0  ;;  %s888_s19 = scalar_lea.vmem %s675_s18, 128  ;;  %p893_p6 = scmp.lt.s32.totalorder %s675_s18, %s675_s18 }
  0x57   :  { %vm483_vm7 = vmand %vm481_vm3, %vm482_vm4  ;;  %p889_p5 = scmp.ne.s32.totalorder %s675_s18, %s888_s19  ;;  %p894_p7 = scmp.lt.s32.totalorder %s888_s19, %s888_s19 }
  0x59   :  { %p895_p8 = por %p894_p7, %p893_p6 }
  0x5b   :  { %p896_p9 = pnand %p895_p8, %p889_p5 }
  0xf0   :  { %v176_v62 = vpop.f32.mrf.mxu0 }
  0xf1   :  { %v177_v63 = vadd.f32 %v683_v61, %v176_v62  ;;  %v685_v61 = vld [vmem:[%s1221_s4 + $0x4] ss:$0 sm:$0xff] }
  0xf2   :  { %v807_v1 = vpop.f32.mrf.mxu0 }
  0xf3   :  { %v180_v2 = vmax.f32 %v177_v63, 0.0 }
  0xf5   :  { %841 = vmatmul.mubr.f32.vlgmr.msra.gmra.mxu1 %v180_v2  ;;  %v919_v2 = vmov 3  }
  0xf6   :  { %739 = vmatpush3.msra.mxu1 %v357_v9  ;;  %v1117_v9 = vsub.f32 -0.33333334, %v1107_v7 }
  0xf7   :  { %740 = vmatprep.subr.mxu1 %v372_v10  ;;  %v1120_v10 = vadd.f32 1.0, %v1107_v7 }
  0xf8   :  { %741 = vmatpush3.msra.mxu1 %v356_v11  ;;  %v1125_v11 = vsub.f32 0.33333334, %v1107_v7 }
  0xf9   :  { %742 = vmatprep.subr.mxu1 %v371_v12  ;;  %v688_v12 = vsel %vm463_vm5, 1.0, %v915_v0  ;;  %vm486_vm5 = vcmp.ge.f32.partialorder %v1107_v7, 1.6666666 }
  0xfa   :  { %743 = vmatpush3.msra.mxu1 %v355_v13  ;;  %v689_v13 = vsel %vm468_vm6, 1.0, %v915_v0  ;;  %vm487_vm6 = vcmp.lt.f32.partialorder %v1107_v7, 2.3333333 }
  0xfb   :  { %744 = vmatprep.subr.mxu1 %v370_v14  ;;  %v1132_v14 = vadd.f32 0.33333334, %v1107_v7  ;;  %vm488_vm8 = vmand %vm486_vm5, %vm487_vm6 }
  0xfc   :  { %745 = vmatpush3.msra.mxu1 %v354_v15  ;;  %v511_v15 = vmul.f32 1.5, %v1114_v8 }
  0xfd   :  { %746 = vmatprep.subr.mxu1 %v369_v16  ;;  %v514_v16 = vmul.f32 1.5, %v1117_v9 }
  0xfe   :  { %747 = vmatpush3.msra.mxu1 %v353_v17  ;;  %v518_v17 = vmul.f32 1.5, %v1120_v10 }
  0xff   :  { %748 = vmatprep.subr.mxu1 %v368_v18  ;;  %v1138_v18 = vsub.f32 1.0, %v1107_v7 }
 0x100   :  { %749 = vmatpush3.msra.mxu1 %v352_v19  ;;  %v521_v19 = vmul.f32 1.5, %v1125_v11 }
 0x101   :  { %750 = vmatprep.subr.mxu1 %v367_v20  ;;  %v1144_v20 = vadd.f32 3.0, %v1107_v7 }
 0x102   :  { %751 = vmatpush3.msra.mxu1 %v351_v21  ;;  %v499_v21 = vsub.f32 -1.6666666, %v1107_v7 }
 0x103   :  { %752 = vmatprep.subr.mxu1 %v366_v22  ;;  %v690_v22 = vsel %vm473_vm11, 1.0, %v915_v0  ;;  %vm493_vm11 = vmand %vm491_vm9, %vm492_vm10 }
 0x104   :  { %753 = vmatpush3.msra.mxu1 %v350_v23  ;;  %v1151_v23 = vadd.f32 2.3333333, %v1107_v7 }
 0x105   :  { %754 = vmatprep.subr.mxu1 %v365_v24  ;;  %v506_v24 = vsub.f32 -1.0, %v1107_v7 }
 0x106   :  { %755 = vmatpush3.msra.mxu1 %v349_v25  ;;  %v691_v25 = vsel %vm478_vm12, 1.0, %v915_v0  ;;  %v557_v58 = vmul.f32 0.75, %v1151_v23  ;;  %vm666_vm12 = vcmask 64512  }
 0x107   :  { %756 = vmatprep.subr.mxu1 %v364_v26  ;;  %v512_v26 = vmul.f32 %v688_v12, %v511_v15 }
 0x108   :  { %757 = vmatpush3.msra.mxu1 %v348_v27  ;;  %v525_v27 = vmul.f32 1.5, %v1132_v14 }
 0x109   :  { %758 = vmatprep.subr.mxu1 %v363_v28  ;;  %v515_v28 = vmul.f32 %v689_v13, %v514_v16 }
 0x10a   :  { %759 = vmatpush3.msra.mxu1 %v347_v29  ;;  %v528_v29 = vmul.f32 1.5, %v1138_v18 }
 0x10b   :  { %760 = vmatprep.subr.mxu1 %v362_v30  ;;  %v562_v30 = vmul.f32 0.75, %v1114_v8 }
 0x10c   :  { %761 = vmatpush3.msra.mxu1 %v346_v31  ;;  %v703_v31 = vmul.f32 -1.442695, %v1107_v7 }
 0x10d   :  { %762 = vmatprep.subr.mxu1 %v361_v37  ;;  %v507_v37 = vmul.f32 1.5, %v506_v24 }
 0x10e   :  { %763 = vmatpush3.msra.mxu1 %v345_v38  ;;  %v686_v38 = vsel %vm453_vm1, 1.0, %v915_v0  ;;  %864 = vpow2.f32 %v703_v31 }
 0x10f   :  { %764 = vmatprep.subr.mxu1 %v360_v39  ;;  %v687_v39 = vsel %vm458_vm2, 1.0, %v915_v0 }
 0x110   :  { %765 = vmatpush3.msra.mxu1 %v344_v40  ;;  %v1166_v40 = vadd.f32 -0.33333334, %v1107_v7 }
 0x111   :  { %766 = vmatprep.subr.mxu1 %v359_v41  ;;  %v1169_v41 = vsub.f32 1.6666666, %v1107_v7 }
 0x112   :  { %767 = vmatpush3.msra.mxu1 %v343_v42  ;;  %v526_v42 = vmul.f32 %v690_v22, %v525_v27 }
 0x113   :  { %768 = vmatprep.subr.mxu1 %v358_v43  ;;  %v516_v43 = vadd.f32 %v515_v28, %v512_v26  ;;  %v574_v31 = vmul.f32 0.75, %v1169_v41 }
 0x114   :  { %769 = vmatpush3.msra.mxu1 %v342_v44  ;;  %v529_v44 = vmul.f32 %v691_v25, %v528_v29 }
 0x115   :  { %v563_v28 = vmul.f32 %v562_v30, %v516_v43  ;;  %v587_v30 = vmul.f32 0.5, %v1144_v20 }
 0x116   :  { %v530_v16 = vadd.f32 %v529_v44, %v526_v42 }
 0x1b5   :  { %v253_v33 = vpop.f32.mrf.mxu1 }
 0x1b6   :  { %v254_v34 = vadd.f32 %v684_v32, %v253_v33  ;;  %v519_v32 = vmul.f32 %v689_v13, %v518_v17  ;;  %v522_v33 = vmul.f32 %v690_v22, %v521_v19 }
 0x1b7   :  { %v842_v35 = vpop.f32.mrf.mxu1 }
 0x1b8   :  { %v257_v36 = vmax.f32 %v254_v34, 0.0  ;;  %v497_v34 = vmul.f32 1.5, %v1144_v20  ;;  %v500_v35 = vmul.f32 1.5, %v499_v21  ;;  %v694_v21 = vsel %vm493_vm11, 1.0, %v915_v0 }
 0x1ba   :  { %334 = vmatmul.mubr.f32.vlgmr.msra.gmra.mxu0 %v257_v36  ;;  %v504_v36 = vmul.f32 1.5, %v1151_v23  ;;  %v498_v47 = vmul.f32 %v686_v38, %v497_v34  ;;  %v501_v48 = vmul.f32 %v687_v39, %v500_v35 }
 0x1bc   :  { %v505_v49 = vmul.f32 %v687_v39, %v504_v36  ;;  %v865_v36 = vpop.eup %864  ;;  %v577_v39 = vmul.f32 0.75, %v1166_v40 }
 0x27a   :  { %v335_v52 = vpop.f32.mrf.mxu0 }
 0x27b   :  { %v336_v53 = vadd.f32 %v335_v52, %v262_v50  ;;  %v508_v50 = vmul.f32 %v688_v12, %v507_v37  ;;  %v535_v52 = vmul.f32 1.5, %v1169_v41  ;;  %v569_v12 = vmul.f32 0.75, %v1138_v18 }
 0x27c   :  { %v337_v54 = vpop.f32.mrf.mxu0 }
 0x27d   :  { %v338_v55 = vadd.f32 %v337_v54, %v266_v51  ;;  %v340_v57 = vmax.f32 %v336_v53, 0.0  ;;  %v532_v51 = vmul.f32 1.5, %v1166_v40  ;;  %v552_v53 = vmul.f32 0.75, %v1144_v20 }
 0x27e   :  { %v692_v54 = vsel %vm483_vm7, 1.0, %v915_v0  ;;  %v570_v37 = vmul.f32 %v569_v12, %v530_v16 }
 0x27f   :  { %v341_v56 = vmax.f32 %v338_v55, 0.0  ;;  %v702_v55 = vadd.f32 -1.6666666, %v1107_v7  ;;  %v540_v17 = vmul.f32 %v692_v54, %v539_v59 }
 0x281   :  { %444 = vmatprep.mubr.f32.mxu1 %v341_v56  ;;  %v1185_v56 = vsub.f32 3.0, %v1107_v7  ;;  %v546_v13 = vmul.f32 1.5, %v702_v55  ;;  %v597_v55 = vmul.f32 0.5, %v1114_v8  ;;  %v607_v8 = vmul.f32 0.5, %v1132_v14 }
 0x282   :  { %445 = vmatmul.mubr.f32.vlgmr.msra.gmra.mxu1 %v340_v57  ;;  %v554_v57 = vmul.f32 0.75, %v506_v24 }
 0x283   :  { %v549_v15 = vmul.f32 1.5, %v1185_v56 }
 0x285   :  { %v550_v35 = vmul.f32 %v694_v21, %v549_v15 }
 0x342   :  { %v770_v60 = vpop.f32.mrf.mxu1 }
 0x344   :  { %v771_v62 = vpop.f32.mrf.mxu1 }
 0x345   :  { %v772_v63 = vadd.f32 %v771_v62, %v770_v60  ;;  %v542_v60 = vmul.f32 1.5, %v1175_v46  ;;  %v509_v62 = vadd.f32 %v508_v50, %v505_v49  ;;  %v592_v49 = vmul.f32 0.5, %v1151_v23 }
 0x346   :  { %v594_v50 = vmul.f32 0.5, %v1125_v11  ;;  %v602_v23 = vmul.f32 0.5, %v1120_v10 }
 0x347   :  { %v447_v1 = vadd.f32 %v772_v63, %v685_v61  ;;  %v502_v61 = vadd.f32 %v501_v48, %v498_v47  ;;  %v559_v63 = vmul.f32 0.75, %v1117_v9  ;;  %v555_v24 = vmul.f32 %v554_v57, %v509_v62 }
 0x348   :  { %v558_v26 = vmul.f32 %v557_v58, %v509_v62  ;;  %v599_v57 = vmul.f32 0.5, %v1138_v18  ;;  %v609_v18 = vmul.f32 0.5, %v1175_v46 }
 0x349   :  { %630 = vperm.xlu1 %858, %v447_v1   ;;  %619 = vperm.xlu0 %856, %v447_v1   ;;  %v553_v22 = vmul.f32 %v552_v53, %v502_v61  ;;  %v560_v27 = vmul.f32 %v559_v63, %v516_v43  ;;  %v589_v43 = vmul.f32 0.5, %v1117_v9  ;;  %v584_v53 = vmul.f32 0.75, %v1185_v56 }
 0x34b   :  { %v556_v42 = vadd.f32 %v555_v24, %v553_v22  ;;  %v561_v44 = vadd.f32 %v560_v27, %v558_v26 }
 0x34d   :  { %859 = vset.pattern.permute.xlu1 %v919_v2  ;;  %857 = vset.pattern.permute.xlu0 %v920_v3  ;;  %v564_v2 = vmul.f32 0.75, %v1125_v11  ;;  %v567_v3 = vmul.f32 0.75, %v1120_v10  ;;  %v588_v9 = vmul.f32 %v587_v30, %v556_v42  ;;  %v590_v61 = vmul.f32 %v589_v43, %v561_v44 }
 0x34e   :  { %636 = vperm.xlu1 %859, %v447_v1   ;;  %624 = vperm.xlu0 %857, %v447_v1   ;;  %v604_v11 = vmul.f32 0.5, %v1169_v41  ;;  %v593_v63 = vmul.f32 %v592_v49, %v561_v44  ;;  %v612_v41 = vmul.f32 0.5, %v1166_v40 }
 0x352   :  { %860 = vset.pattern.permute.xlu1 %v921_v4  ;;  %861 = vset.pattern.permute.xlu0 %v922_v5  ;;  %v533_v4 = vmul.f32 %v691_v25, %v532_v51  ;;  %v536_v5 = vmul.f32 %v692_v54, %v535_v52  ;;  %v572_v25 = vmul.f32 0.75, %v1132_v14  ;;  %v582_v52 = vmul.f32 0.75, %v701_v45 }
 0x353   :  { %642 = vperm.xlu1 %860, %v447_v1   ;;  %648 = vperm.xlu0 %861, %v447_v1   ;;  %v656_v54 = vadd.f32 1.0, %v865_v36 }
 0x354   :  { %v537_v29 = vadd.f32 %v536_v5, %v533_v4  ;;  %v573_v47 = vmul.f32 %v572_v25, %v530_v16 }
 0x355   :  { %866 = vrcp.f32 %v656_v54 }
 0x356   :  { %v575_v48 = vmul.f32 %v574_v31, %v537_v29  ;;  %v578_v58 = vmul.f32 %v577_v39, %v537_v29 }
 0x357   :  { %862 = vset.pattern.permute.xlu1 %v923_v6  ;;  %863 = vset.pattern.permute.xlu0 %v923_v6  ;;  %v523_v6 = vadd.f32 %v522_v33, %v519_v32 }
 0x358   :  { %662 = vperm.xlu1 %862, %v447_v1   ;;  %v693_v1 = vsel %vm488_vm8, 1.0, %v915_v0  ;;  %v579_v0 = vmul.f32 0.75, %v1175_v46  ;;  %v576_v62 = vadd.f32 %v575_v48, %v573_v47 }
 0x359   :  { %v543_v19 = vmul.f32 %v693_v1, %v542_v60  ;;  %v565_v32 = vmul.f32 %v564_v2, %v523_v6  ;;  %v568_v33 = vmul.f32 %v567_v3, %v523_v6  ;;  %v547_v34 = vmul.f32 %v693_v1, %v546_v13 }
 0x35a   :  { %v591_v13 = vadd.f32 %v590_v61, %v588_v9  ;;  %v605_v16 = vmul.f32 %v604_v11, %v576_v62  ;;  %v608_v21 = vmul.f32 %v607_v8, %v576_v62 }
 0x35b   :  { %v544_v38 = vadd.f32 %v543_v19, %v540_v17  ;;  %v551_v51 = vadd.f32 %v550_v35, %v547_v34  ;;  %v566_v20 = vadd.f32 %v565_v32, %v563_v28  ;;  %v571_v60 = vadd.f32 %v570_v37, %v568_v33 }
 0x35c   :  { %v614_v19 = vmul.f32 0.5, %v1185_v56 }
 0x35d   :  { %v580_v59 = vmul.f32 %v579_v0, %v544_v38  ;;  %v595_v45 = vmul.f32 %v594_v50, %v566_v20  ;;  %v583_v1 = vmul.f32 %v582_v52, %v544_v38  ;;  %v585_v2 = vmul.f32 %v584_v53, %v551_v51 }
 0x35e   :  { %v598_v4 = vmul.f32 %v597_v55, %v566_v20  ;;  %v600_v5 = vmul.f32 %v599_v57, %v571_v60  ;;  %v603_v15 = vmul.f32 %v602_v23, %v571_v60 }
 0x35f   :  { %v581_v3 = vadd.f32 %v580_v59, %v578_v58  ;;  %v596_v10 = vadd.f32 %v595_v45, %v593_v63  ;;  %v586_v17 = vadd.f32 %v585_v2, %v583_v1 }
 0x360   :  { %v601_v24 = vadd.f32 %v600_v5, %v598_v4  ;;  %v606_v26 = vadd.f32 %v605_v16, %v603_v15 }
 0x361   :  { %v610_v22 = vmul.f32 %v609_v18, %v581_v3  ;;  %v613_v29 = vmul.f32 %v612_v41, %v581_v3  ;;  %v615_v25 = vmul.f32 %v614_v19, %v586_v17 }
 0x362   :  { %v867_v40 = vpop.eup %866 }
 0x363   :  { %v611_v31 = vadd.f32 %v610_v22, %v608_v21  ;;  %v616_v37 = vadd.f32 %v615_v25, %v613_v29  ;;  %v659_v44 = vmul.f32 %v867_v40, %v1107_v7 }
 0x3c4   :  { %v631_v6 = vpop.permute.xlu1 %630  ;;  %v620_v12 = vpop.permute.xlu0 %619 }
 0x3c5   :  { %v622_v46 = vmul.f32 %v620_v12, %v591_v13  ;;  %v633_v32 = vmul.f32 %v631_v6, %v601_v24 }
 0x3c9   :  { %v637_v14 = vpop.permute.xlu1 %636  ;;  %v625_v27 = vpop.permute.xlu0 %624 }
 0x3ca   :  { %v627_v28 = vmul.f32 %v625_v27, %v596_v10  ;;  %v639_v34 = vmul.f32 %v637_v14, %v606_v26 }
 0x3cc   :  { %v628_v33 = vadd.f32 %v627_v28, %v622_v46 }
 0x3ce   :  { %v634_v35 = vadd.f32 %v633_v32, %v628_v33  ;;  %v643_v36 = vpop.permute.xlu1 %642  ;;  %v649_v56 = vpop.permute.xlu0 %648 }
 0x3cf   :  { %v645_v38 = vmul.f32 %v643_v36, %v611_v31  ;;  %v651_v42 = vmul.f32 %v649_v56, %v616_v37 }
 0x3d0   :  { %v640_v39 = vadd.f32 %v639_v34, %v634_v35 }
 0x3d2   :  { %v646_v0 = vadd.f32 %v645_v38, %v640_v39 }
 0x3d3   :  { %v663_v47 = vpop.permute.xlu1 %662 }
 0x3d4   :  { %v652_v30 = vadd.f32 %v651_v42, %v646_v0 }
 0x3d6   :  { %v660_v43 = vadd.f32 %v659_v44, %v652_v30 }
 0x3d8   :  { %v665_v48 = vmul.f32 %v663_v47, %v660_v43 }
 0x3da   :  { %667 = vst.msk [vmem:[#allocation5] sm:$0xff] %vm666_vm12, %v665_v48 }
 0x3db   :  { %899 = shalt.err (!%p896_p9)
}
 0x3dc   :  { %677 = dma.vmem_to_hbm [thread:$0]  %s675_s18, 128, %s1222_s5, [#allocation4]  }
 0x3dd   :  { %910 = dma.done.wait [#allocation4], 128  }
 0x3de   :  { %911 = vsyncadd [#allocation4], 4294967168 }
 0x3df   :  { %681 = vsyncpa [#allocation3], 1 }
 0x3e0   :  { %682 = vsyncpa [#allocation4], 1 }

</bundles_post_ra>
